<compile_context>
chip_gen: v6e
topology: v6e:2x2x1
jax: 0.10.0
libtpu: 0.0.40
codegen_flags: <defaults>
</compile_context>

<pallas_src>
import jax
import jax.numpy as jnp
from jax import lax
from jax.experimental import pallas as pl
from jax.experimental.pallas import tpu as pltpu

HIDDEN = 640               # RNA-FM hidden size (nn.Linear(640, num_labels))
LANES = 128                # TPU lane width
DEFAULT_TM = 1024          # rows (tokens) per tile; multiple of 16
VMEM_LIMIT = 32 * 1024 * 1024  # above v5e's 16 MiB scoped default; <= v7x physical


def _round_up(x: int, m: int) -> int:
    return ((x + m - 1) // m) * m


def _row_tile(m: int, tm: int) -> int:
    """Row-tile size: full-extent block if M fits, else a multiple of 16."""
    if m <= tm:
        return m                      # single block equal to full dim: always legal
    return max(16, (tm // 16) * 16)   # bf16 sublane packing wants multiples of 16


# --------------------------------------------------------------------------
# Kernel 1: fused embedding gather (backbone stub) + classifier projection.
# --------------------------------------------------------------------------
def fused_embed_classifier_kernel(ids_ref, emb_ref, w_ref, b_ref, o_ref):
    # ids_ref: (TM, 1) int32       token ids for this row tile
    # emb_ref: (V_pad, 640) bf16   resident embedding table (zero-padded rows)
    # w_ref:   (640, N_pad) bf16   resident classifier weight (transposed)
    # b_ref:   (1, N_pad) f32      resident bias
    # o_ref:   (TM, N_pad) f32     logits tile
    ids = ids_ref[...]                                              # (TM, 1)
    iota = lax.broadcasted_iota(jnp.int32,
                                (ids.shape[0], emb_ref.shape[0]), 1)
    onehot = jnp.where(iota == ids, 1.0, 0.0).astype(jnp.bfloat16)  # (TM, V_pad)
    # Gather via MXU: one-hot selection is exact, so x == bf16(embed_table[ids]).
    x = jnp.dot(onehot, emb_ref[...],
                preferred_element_type=jnp.float32).astype(jnp.bfloat16)
    acc = jnp.dot(x, w_ref[...], preferred_element_type=jnp.float32)
    o_ref[...] = (acc + b_ref[...]).astype(o_ref.dtype)


def fused_embed_classifier(input_ids, embed_table, weight, bias, *, tm: int = DEFAULT_TM):
    """Embedding lookup (backbone stub) + nn.Linear(640, N), fused in one kernel.

    input_ids:   (B, S) int
    embed_table: (V, 640) f32
    weight:      (N, 640) f32   (PyTorch Linear layout)
    bias:        (N,) f32
    returns:     (B, S, N) f32
    """
    B, S = input_ids.shape
    V, H = embed_table.shape
    assert H == HIDDEN
    N = weight.shape[0]
    M = B * S

    n_pad = max(LANES, _round_up(N, LANES))   # lane-dense output (keep exactly 128 for small N)
    v_pad = max(LANES, _round_up(V, LANES))   # lane-dense one-hot; padded rows are zero
    tm_eff = _row_tile(M, tm)
    grid = (pl.cdiv(M, tm_eff),)              # ragged edge tile masked by Pallas

    ids = input_ids.reshape(M, 1).astype(jnp.int32)
    emb = jnp.zeros((v_pad, H), jnp.bfloat16).at[:V].set(
        embed_table.astype(jnp.bfloat16))
    w = jnp.zeros((H, n_pad), jnp.bfloat16).at[:, :N].set(
        jnp.transpose(weight).astype(jnp.bfloat16))
    b = jnp.zeros((1, n_pad), jnp.float32).at[:, :N].set(
        bias.astype(jnp.float32).reshape(1, N))

    cost = pl.CostEstimate(
        flops=2 * M * v_pad * H + 2 * M * H * n_pad,
        transcendentals=0,
        bytes_accessed=M * 4 + v_pad * H * 2 + H * n_pad * 2 + n_pad * 4 + M * n_pad * 4,
    )

    logits_2d = pl.pallas_call(
        fused_embed_classifier_kernel,
        out_shape=jax.ShapeDtypeStruct((M, n_pad), jnp.float32),
        grid=grid,
        in_specs=[
            pl.BlockSpec((tm_eff, 1), lambda i: (i, 0)),   # streamed ids tiles
            pl.BlockSpec((v_pad, H), lambda i: (0, 0)),    # embed table: resident
            pl.BlockSpec((H, n_pad), lambda i: (0, 0)),    # weight: resident
            pl.BlockSpec((1, n_pad), lambda i: (0, 0)),    # bias: resident
        ],
        out_specs=pl.BlockSpec((tm_eff, n_pad), lambda i: (i, 0)),
        compiler_params=pltpu.CompilerParams(
            dimension_semantics=("parallel",),             # shard rows across TCs (v7x)
            vmem_limit_bytes=VMEM_LIMIT,
        ),
        cost_estimate=cost,
    )(ids, emb, w, b)

    # Lane slice only (rows are exact); cheap relative to the fused traffic.
    return logits_2d[:, :N].reshape(B, S, N)


# --------------------------------------------------------------------------
# Kernel 2: standalone classifier head for a real (B, S, 640) f32 backbone
# output.  Activations stream as f32 and are cast to bf16 inside the kernel.
# --------------------------------------------------------------------------
def classifier_kernel(x_ref, w_ref, b_ref, o_ref):
    # x_ref: (TM, 640) f32    w_ref: (640, N_pad) bf16 (resident)
    # b_ref: (1, N_pad) f32   o_ref: (TM, N_pad) f32
    x = x_ref[...].astype(jnp.bfloat16)      # in-kernel cast: no extra HBM pass
    acc = jnp.dot(x, w_ref[...], preferred_element_type=jnp.float32)
    o_ref[...] = (acc + b_ref[...]).astype(o_ref.dtype)


def classifier_head(seq_output, weight, bias, *, tm: int = DEFAULT_TM):
    """nn.Linear(640, num_labels) applied token-wise via a Pallas kernel.

    seq_output: (B, S, 640) f32
    weight:     (N, 640) f32
    bias:       (N,) f32
    returns:    (B, S, N) f32
    """
    B, S, H = seq_output.shape
    assert H == HIDDEN
    N = weight.shape[0]
    M = B * S

    n_pad = max(LANES, _round_up(N, LANES))
    tm_eff = _row_tile(M, tm)
    grid = (pl.cdiv(M, tm_eff),)              # no jnp.pad over M; edge tile masked

    x = seq_output.reshape(M, H)              # stays f32 (cast happens in-kernel)
    w = jnp.zeros((H, n_pad), jnp.bfloat16).at[:, :N].set(
        jnp.transpose(weight).astype(jnp.bfloat16))
    b = jnp.zeros((1, n_pad), jnp.float32).at[:, :N].set(
        bias.astype(jnp.float32).reshape(1, N))

    cost = pl.CostEstimate(
        flops=2 * M * H * n_pad,
        transcendentals=0,
        bytes_accessed=M * H * 4 + H * n_pad * 2 + n_pad * 4 + M * n_pad * 4,
    )

    logits_2d = pl.pallas_call(
        classifier_kernel,
        out_shape=jax.ShapeDtypeStruct((M, n_pad), jnp.float32),
        grid=grid,
        in_specs=[
            pl.BlockSpec((tm_eff, H), lambda i: (i, 0)),   # streamed f32 row tiles
            pl.BlockSpec((H, n_pad), lambda i: (0, 0)),    # weight: resident
            pl.BlockSpec((1, n_pad), lambda i: (0, 0)),    # bias: resident
        ],
        out_specs=pl.BlockSpec((tm_eff, n_pad), lambda i: (i, 0)),
        compiler_params=pltpu.CompilerParams(
            dimension_semantics=("parallel",),
            vmem_limit_bytes=VMEM_LIMIT,
        ),
        cost_estimate=cost,
    )(x, w, b)

    return logits_2d[:, :N].reshape(B, S, N)


# --------------------------------------------------------------------------
# Module forward
# --------------------------------------------------------------------------
def rnafm_for_token_classification_forward(params, input_ids, attention_mask=None,
                                           *, fuse_backbone=True):
    # attention_mask is accepted but unused: the PyTorch head projects every
    # token regardless of padding (matches the reference module).
    # nn.Dropout(0.1) in eval mode is the identity.
    if fuse_backbone:
        # Backbone stub (embedding lookup) fused with the classifier head:
        # the (B, S, 640) representation never touches HBM.
        logits = fused_embed_classifier(
            input_ids, params["embed_table"],
            params["classifier_w"], params["classifier_b"])
    else:
        # Path for a real backbone producing a (B, S, 640) f32 representation.
        sequence_output = jnp.take(params["embed_table"], input_ids, axis=0)
        logits = classifier_head(
            sequence_output, params["classifier_w"], params["classifier_b"])
    return {"loss": None, "logits": logits}


if __name__ == "__main__":
    B, S = 2, 8
    VOCAB = 25
    NUM_LABELS = 3

    key = jax.random.PRNGKey(0)
    k_emb, k_w, k_b, k_ids = jax.random.split(key, 4)

    params = {
        "embed_table": jax.random.normal(k_emb, (VOCAB, HIDDEN), jnp.float32) * 0.02,
        "classifier_w": jax.random.normal(k_w, (NUM_LABELS, HIDDEN), jnp.float32) * 0.02,
        "classifier_b": jax.random.normal(k_b, (NUM_LABELS,), jnp.float32) * 0.02,
    }

    input_ids = jax.random.randint(k_ids, (B, S), 0, VOCAB, dtype=jnp.int32)
    attention_mask = jnp.ones((B, S), dtype=jnp.int32)

    out_fused = rnafm_for_token_classification_forward(
        params, input_ids, attention_mask, fuse_backbone=True)
    logits_fused = jax.block_until_ready(out_fused["logits"])

    out_split = rnafm_for_token_classification_forward(
        params, input_ids, attention_mask, fuse_backbone=False)
    logits_split = jax.block_until_ready(out_split["logits"])

    # Reference: same math with bf16-rounded activations/weights and f32
    # accumulation (matches the kernels' MXU bf16 x bf16 -> f32 semantics).
    seq = jnp.take(params["embed_table"], input_ids, axis=0)
    seq_bf = seq.astype(jnp.bfloat16).astype(jnp.float32)
    w_bf = params["classifier_w"].astype(jnp.bfloat16).astype(jnp.float32)
    ref = seq_bf @ w_bf.T + params["classifier_b"]

    assert logits_fused.shape == (B, S, NUM_LABELS)
    assert logits_split.shape == (B, S, NUM_LABELS)
    assert jnp.allclose(logits_fused, ref, atol=1e-4, rtol=1e-4)
    assert jnp.allclose(logits_split, ref, atol=1e-4, rtol=1e-4)

    print("KERNEL_OK")
</pallas_src>

<mosaic_0001>
module attributes {stable_mosaic.version = 11 : i64} {
  func.func @fused_embed_classifier_kernel(%arg0: i32, %arg1: memref<16x1xi32, #tpu.memory_space<vmem>>, %arg2: memref<128x640xbf16, #tpu.memory_space<vmem>>, %arg3: memref<640x128xbf16, #tpu.memory_space<vmem>>, %arg4: memref<1x128xf32, #tpu.memory_space<vmem>>, %arg5: memref<16x128xf32, #tpu.memory_space<vmem>>) attributes {dimension_semantics = [#tpu.dimension_semantics<parallel>], iteration_bounds = array<i64: 1>, scalar_prefetch = 0 : i64, scratch_operands = 0 : i64, tpu.core_type = #tpu.core_type<tc>, window_params = [{transform_indices = @transform_0, window_bounds = array<i64: 16, 1>}, {pipeline_mode = #tpu.pipeline_mode<synchronous>, transform_indices = @transform_1, window_bounds = array<i64: 128, 640>}, {pipeline_mode = #tpu.pipeline_mode<synchronous>, transform_indices = @transform_2, window_bounds = array<i64: 640, 128>}, {pipeline_mode = #tpu.pipeline_mode<synchronous>, transform_indices = @transform_3, window_bounds = array<i64: 1, 128>}, {transform_indices = @transform_4, window_bounds = array<i64: 16, 128>}]} {
    %c0 = arith.constant 0 : index
    %c0_0 = arith.constant 0 : index
    %0 = vector.load %arg1[%c0, %c0_0] : memref<16x1xi32, #tpu.memory_space<vmem>>, vector<16x1xi32>
    %1 = tpu.iota {dimensions = array<i32: 1>} : vector<16x128xi32>
    %2 = vector.broadcast %0 : vector<16x1xi32> to vector<16x128xi32>
    %3 = arith.cmpi eq, %1, %2 : vector<16x128xi32>
    %cst = arith.constant 1.000000e+00 : f32
    %cst_1 = arith.constant 0.000000e+00 : f32
    %4 = vector.broadcast %cst : f32 to vector<16x128xf32>
    %5 = vector.broadcast %cst_1 : f32 to vector<16x128xf32>
    %6 = arith.select %3, %4, %5 : vector<16x128xi1>, vector<16x128xf32>
    %7 = arith.truncf %6 : vector<16x128xf32> to vector<16x128xbf16>
    %c0_2 = arith.constant 0 : index
    %c0_3 = arith.constant 0 : index
    %8 = vector.load %arg2[%c0_2, %c0_3] : memref<128x640xbf16, #tpu.memory_space<vmem>>, vector<128x640xbf16>
    %cst_4 = arith.constant dense<0.000000e+00> : vector<16x640xf32>
    %9 = tpu.matmul %7, %8, %cst_4 {dimension_numbers = #tpu.dot_dimension_numbers<[1], [0], [0], [1], [0, 0, 1, 1], [], []>} : vector<16x128xbf16>, vector<128x640xbf16>, vector<16x640xf32> -> vector<16x640xf32>
    %10 = arith.truncf %9 : vector<16x640xf32> to vector<16x640xbf16>
    %c0_5 = arith.constant 0 : index
    %c0_6 = arith.constant 0 : index
    %11 = vector.load %arg3[%c0_5, %c0_6] : memref<640x128xbf16, #tpu.memory_space<vmem>>, vector<640x128xbf16>
    %cst_7 = arith.constant dense<0.000000e+00> : vector<16x128xf32>
    %12 = tpu.matmul %10, %11, %cst_7 {dimension_numbers = #tpu.dot_dimension_numbers<[1], [0], [0], [1], [0, 0, 1, 1], [], []>} : vector<16x640xbf16>, vector<640x128xbf16>, vector<16x128xf32> -> vector<16x128xf32>
    %c0_8 = arith.constant 0 : index
    %c0_9 = arith.constant 0 : index
    %13 = vector.load %arg4[%c0_8, %c0_9] : memref<1x128xf32, #tpu.memory_space<vmem>>, vector<1x128xf32>
    %14 = vector.broadcast %13 : vector<1x128xf32> to vector<16x128xf32>
    %15 = arith.addf %12, %14 : vector<16x128xf32>
    %c0_10 = arith.constant 0 : index
    %c0_11 = arith.constant 0 : index
    %16 = vector.load %arg5[%c0_10, %c0_11] : memref<16x128xf32, #tpu.memory_space<vmem>>, vector<16x128xf32>
    tpu.vector_store %arg5[%c0_10, %c0_11], %15 {strides = array<i32>} : memref<16x128xf32, #tpu.memory_space<vmem>>, vector<16x128xf32>,
    return
  }
  func.func @transform_0(%arg0: i32) -> (i32, i32) {
    %c0_i32 = arith.constant 0 : i32
    %c0_i32_0 = arith.constant 0 : i32
    return %arg0, %c0_i32 : i32, i32
  }
  func.func @transform_1(%arg0: i32) -> (i32, i32) {
    %c0_i32 = arith.constant 0 : i32
    %c0_i32_0 = arith.constant 0 : i32
    %c0_i32_1 = arith.constant 0 : i32
    return %c0_i32, %c0_i32_0 : i32, i32
  }
  func.func @transform_2(%arg0: i32) -> (i32, i32) {
    %c0_i32 = arith.constant 0 : i32
    %c0_i32_0 = arith.constant 0 : i32
    %c0_i32_1 = arith.constant 0 : i32
    return %c0_i32, %c0_i32_0 : i32, i32
  }
  func.func @transform_3(%arg0: i32) -> (i32, i32) {
    %c0_i32 = arith.constant 0 : i32
    %c0_i32_0 = arith.constant 0 : i32
    %c0_i32_1 = arith.constant 0 : i32
    return %c0_i32, %c0_i32_0 : i32, i32
  }
  func.func @transform_4(%arg0: i32) -> (i32, i32) {
    %c0_i32 = arith.constant 0 : i32
    %c0_i32_0 = arith.constant 0 : i32
    return %arg0, %c0_i32 : i32, i32
  }
}

</mosaic_0001>

<bundles_post_ra>
// kernel: tpu_custom_call.1
= control target key start
LH: loop header
LB: loop body
LE: loop exit
PB: predicated region body
PF: predicated region fallthrough
CT: control target
= control target key end

     0   :  { %9 = vsyncpa [#allocation3], 0  ;;  %s1371_s0 = inlined_call_operand.vmem [shape: s32[16,1], index: 0, kind: input, shape index: {}]   ;;  %s1372_s1 = inlined_call_operand.hbm [shape: bf16[128,640], index: 1, kind: input, shape index: {}]   ;;  %s1373_s2 = inlined_call_operand.hbm [shape: bf16[640,128], index: 2, kind: input, shape index: {}]   ;;  %s1374_s3 = inlined_call_operand.vmem [shape: f32[1,128], index: 3, kind: input, shape index: {}]   ;;  %s1375_s4 = inlined_call_operand.hbm [shape: f32[16,128], index: 4, kind: output, shape index: {}]  }
   0x1   :  { %10 = vsyncpa [#allocation6], 0 }
   0x2   :  { %11 = vsyncpa [#allocation4], 0  ;;  %s1285_s15 = smov [#allocation2]  }
   0x3   :  { %s19_s16 = sshll.u32 %s1285_s15, 4  ;;  %s20_s16 = int_to_ptr.vmem [resolvable:$true] %s19_s16 }
   0x4   :  { %s1227_s17 = scalar_lea.vmem %s20_s16, 5120  ;;  %p1232_p1 = scmp.lt.s32.totalorder %s20_s16, %s20_s16 }
   0x5   :  { %p1228_p0 = scmp.ne.s32.totalorder %s20_s16, %s1227_s17  ;;  %p1233_p2 = scmp.lt.s32.totalorder %s1227_s17, %s1227_s17 }
   0x7   :  { %p1234_p3 = por %p1233_p2, %p1232_p1 }
   0x9   :  { %p1235_p4 = pnand %p1234_p3, %p1228_p0 }
   0xb   :  { %1238 = shalt.err (!%p1235_p4)
}
   0xc   :  { %s1286_s18 = smov 320   ;;  %s1287_s19 = smov 20  }
   0xd   :  { %25 = dma.hbm_to_vmem [thread:$0]  %s1372_s1, 5120, %s20_s16, [#allocation3], %s1286_s18, %s1286_s18, %s1287_s19  }
   0xe   :  { %s1288_s22 = smov [#allocation5]  }
   0xf   :  { %s31_s23 = sshll.u32 %s1288_s22, 4  ;;  %s32_s23 = int_to_ptr.vmem [resolvable:$true] %s31_s23 }
  0x10   :  { %s1247_s24 = scalar_lea.vmem %s32_s23, 5120  ;;  %p1252_p6 = scmp.lt.s32.totalorder %s32_s23, %s32_s23 }
  0x11   :  { %p1248_p5 = scmp.ne.s32.totalorder %s32_s23, %s1247_s24  ;;  %p1253_p7 = scmp.lt.s32.totalorder %s1247_s24, %s1247_s24 }
  0x13   :  { %p1254_p8 = por %p1253_p7, %p1252_p6 }
  0x15   :  { %p1255_p9 = pnand %p1254_p8, %p1248_p5 }
  0x17   :  { %1258 = shalt.err (!%p1255_p9)
}
  0x18   :  { %s1289_s25 = smov 64   ;;  %s1290_s26 = smov 4  }
  0x19   :  { %37 = dma.hbm_to_vmem [thread:$0]  %s1373_s2, 5120, %s32_s23, [#allocation6], %s1289_s25, %s1289_s25, %s1290_s26  }
  0x1a   :  { %1279 = dma.done.wait [#allocation3], 5120  }
  0x1b   :  { %1280 = vsyncadd [#allocation3], 4294962176 }
  0x1c   :  { %1281 = dma.done.wait [#allocation6], 5120  }
  0x1d   :  { %1282 = vsyncadd [#allocation6], 4294962176  ;;  %v1291_v0 = vmov 0   ;;  %v47_v1 = vld [vmem:[%s1371_s0] sm:$0xff]  ;;  %v48_v2 = vld [vmem:[%s1371_s0 + $0x8] sm:$0xff]  ;;  %v1292_v35 = vmov 0.0   ;;  %v49_v37 = vlaneseq }
  0x1e   :  { %1122 = vset.pattern.permute.xlu0 %v1291_v0  ;;  %350 = vmatprep.mubr.bf16.mxu0 %v1291_v0  ;;  %v1123_v3 = vld [vmem:[#allocation2 + $0x11c] ss:$20 sps:$4 sm:$0xff]   ;;  %v1125_v4 = vld [vmem:[#allocation2 + $0x118] ss:$20 sps:$4 sm:$0xff]   ;;  %v1128_v6 = vld [vmem:[#allocation2 + $0x120] ss:$20 sps:$4 sm:$0xff]  }
  0x1f   :  { %393 = vmatprep.mubr.bf16.mxu1 %v1291_v0  ;;  %52 = vperm.xlu0 %1122, %v47_v1   ;;  %v1126_v5 = vld [vmem:[#allocation2 + $0x124] ss:$20 sps:$4 sm:$0xff]   ;;  %v1129_v7 = vld [vmem:[#allocation2 + $0xf4] ss:$20 sps:$4 sm:$0xff]   ;;  %v1132_v9 = vld [vmem:[#allocation2 + $0xfc] ss:$20 sps:$4 sm:$0xff]  }
  0x20   :  { %318 = vmatprep.subr.bf16.mxu0 %v1123_v3  ;;  %361 = vmatprep.subr.bf16.mxu1 %v1126_v5  ;;  %v1131_v8 = vld [vmem:[#allocation2 + $0xf0] ss:$20 sps:$4 sm:$0xff]   ;;  %v1134_v10 = vld [vmem:[#allocation2 + $0xf8] ss:$20 sps:$4 sm:$0xff]   ;;  %v1137_v12 = vld [vmem:[#allocation2 + $0xc8] ss:$20 sps:$4 sm:$0xff]  }
  0x21   :  { %319 = vmatpush1.bf16.msra.mxu0 %v1125_v4  ;;  %362 = vmatpush1.bf16.msra.mxu1 %v1128_v6  ;;  %v1135_v11 = vld [vmem:[#allocation2 + $0xcc] ss:$20 sps:$4 sm:$0xff]   ;;  %v1138_v13 = vld [vmem:[#allocation2 + $0xd4] ss:$20 sps:$4 sm:$0xff]   ;;  %v1140_v14 = vld [vmem:[#allocation2 + $0xd0] ss:$20 sps:$4 sm:$0xff]  }
  0x22   :  { %320 = vmatprep.subr.bf16.mxu0 %v1129_v7  ;;  %363 = vmatprep.subr.bf16.mxu1 %v1132_v9  ;;  %v1141_v15 = vld [vmem:[#allocation2 + $0xa4] ss:$20 sps:$4 sm:$0xff]   ;;  %v1144_v16 = vld [vmem:[#allocation2 + $0xac] ss:$20 sps:$4 sm:$0xff]   ;;  %v1146_v18 = vld [vmem:[#allocation2 + $0xa8] ss:$20 sps:$4 sm:$0xff]  }
  0x23   :  { %55 = vperm.xlu0 %1122, %v48_v2   ;;  %v1143_v17 = vld [vmem:[#allocation2 + $0xa0] ss:$20 sps:$4 sm:$0xff]   ;;  %v1147_v19 = vld [vmem:[#allocation2 + $0x7c] ss:$20 sps:$4 sm:$0xff]   ;;  %v1150_v20 = vld [vmem:[#allocation2 + $0x84] ss:$20 sps:$4 sm:$0xff]  }
  0x24   :  { %v1149_v21 = vld [vmem:[#allocation2 + $0x78] ss:$20 sps:$4 sm:$0xff]   ;;  %v1152_v22 = vld [vmem:[#allocation2 + $0x80] ss:$20 sps:$4 sm:$0xff]   ;;  %v1156_v24 = vld [vmem:[#allocation2 + $0x5c] ss:$20 sps:$4 sm:$0xff]  }
  0x25   :  { %321 = vmatpush1.bf16.msra.mxu0 %v1131_v8  ;;  %364 = vmatpush1.bf16.msra.mxu1 %v1134_v10  ;;  %v1153_v23 = vld [vmem:[#allocation2 + $0x54] ss:$20 sps:$4 sm:$0xff]   ;;  %v1155_v25 = vld [vmem:[#allocation2 + $0x50] ss:$20 sps:$4 sm:$0xff]   ;;  %v1158_v26 = vld [vmem:[#allocation2 + $0x58] ss:$20 sps:$4 sm:$0xff]  }
  0x26   :  { %322 = vmatprep.subr.bf16.mxu0 %v1135_v11  ;;  %365 = vmatprep.subr.bf16.mxu1 %v1138_v13  ;;  %v1159_v27 = vld [vmem:[#allocation2 + $0x2c] ss:$20 sps:$4 sm:$0xff]   ;;  %v1162_v28 = vld [vmem:[#allocation2 + $0x34] ss:$20 sps:$4 sm:$0xff]   ;;  %v1164_v30 = vld [vmem:[#allocation2 + $0x30] ss:$20 sps:$4 sm:$0xff]  }
  0x27   :  { %v1161_v29 = vld [vmem:[#allocation2 + $0x28] ss:$20 sps:$4 sm:$0xff]   ;;  %v1165_v31 = vld [vmem:[#allocation2 + $0x4] ss:$20 sps:$4 sm:$0xff]   ;;  %v1168_v32 = vld [vmem:[#allocation2 + $0xc] ss:$20 sps:$4 sm:$0xff]  }
  0x28   :  { %v1167_v33 = vld [vmem:[#allocation2] ss:$20 sps:$4 sm:$0xff]   ;;  %v1170_v34 = vld [vmem:[#allocation2 + $0x8] ss:$20 sps:$4 sm:$0xff]   ;;  %v50_v39 = vand.u32 127, %v49_v37  ;;  %vm1294_vm3 = vmmov 0  }
  0x29   :  { %323 = vmatpush1.bf16.msra.mxu0 %v1137_v12  ;;  %366 = vmatpush1.bf16.msra.mxu1 %v1140_v14  ;;  %v1179_v36 = vld [vmem:[#allocation5 + $0x78] sm:$0xff]   ;;  %v1183_v44 = vld [vmem:[#allocation5 + $0x70] sm:$0xff]   ;;  %v1293_v45 = vmov 1.0|1.0   ;;  %v1187_v48 = vld [vmem:[#allocation5 + $0x68] sm:$0xff]   ;;  %s1295_s6 = smov [#allocation7]  }
  0x2a   :  { %324 = vmatprep.subr.bf16.mxu0 %v1141_v15  ;;  %367 = vmatprep.subr.bf16.mxu1 %v1144_v16  ;;  %v1171_v41 = vld [vmem:[#allocation2 + $0x128] ss:$20 sps:$4 sm:$0xff]   ;;  %v1172_v46 = vld [vmem:[#allocation2 + $0x100] ss:$20 sps:$4 sm:$0xff]   ;;  %v1173_v49 = vld [vmem:[#allocation2 + $0xd8] ss:$20 sps:$4 sm:$0xff]  }
  0x2b   :  { %v1180_v42 = vld [vmem:[#allocation5 + $0x38] sm:$0xff]   ;;  %v1184_v47 = vld [vmem:[#allocation5 + $0x30] sm:$0xff]   ;;  %v1188_v50 = vld [vmem:[#allocation5 + $0x28] sm:$0xff]   ;;  %s907_s7 = sshll.u32 %s1295_s6, 4  ;;  %s908_s7 = int_to_ptr.vmem [resolvable:$true] %s907_s7 }
  0x2c   :  { %v1191_v51 = vld [vmem:[#allocation5 + $0x60] sm:$0xff]   ;;  %v1195_v54 = vld [vmem:[#allocation5 + $0x58] sm:$0xff]   ;;  %v1199_v57 = vld [vmem:[#allocation5 + $0x50] sm:$0xff]   ;;  %p1264_p11 = scmp.lt.s32.totalorder %s908_s7, %s908_s7 }
  0x2d   :  { %325 = vmatpush1.bf16.msra.mxu0 %v1143_v17  ;;  %368 = vmatpush1.bf16.msra.mxu1 %v1146_v18  ;;  %v1174_v52 = vld [vmem:[#allocation2 + $0xb0] ss:$20 sps:$4 sm:$0xff]   ;;  %v1175_v55 = vld [vmem:[#allocation2 + $0x88] ss:$20 sps:$4 sm:$0xff]   ;;  %v1176_v58 = vld [vmem:[#allocation2 + $0x60] ss:$20 sps:$4 sm:$0xff]  }
  0x2e   :  { %326 = vmatprep.subr.bf16.mxu0 %v1147_v19  ;;  %369 = vmatprep.subr.bf16.mxu1 %v1150_v20  ;;  %v1192_v53 = vld [vmem:[#allocation5 + $0x20] sm:$0xff]   ;;  %v1196_v56 = vld [vmem:[#allocation5 + $0x18] sm:$0xff]   ;;  %v1200_v59 = vld [vmem:[#allocation5 + $0x10] sm:$0xff]  }
  0x2f   :  { %v1177_v60 = vld [vmem:[#allocation2 + $0x38] ss:$20 sps:$4 sm:$0xff]   ;;  %v1178_v61 = vld [vmem:[#allocation2 + $0x10] ss:$20 sps:$4 sm:$0xff]  }
  0x30   :  { %v1181_v62 = vld [vmem:[#allocation5 + $0xf8] sm:$0xff]   ;;  %v1185_v0 = vld [vmem:[#allocation5 + $0xf0] sm:$0xff]   ;;  %v1189_v2 = vld [vmem:[#allocation5 + $0xe8] sm:$0xff]  }
  0x31   :  { %327 = vmatpush1.bf16.msra.mxu0 %v1149_v21  ;;  %370 = vmatpush1.bf16.msra.mxu1 %v1152_v22  ;;  %v1182_v63 = vld [vmem:[#allocation5 + $0xb8] sm:$0xff]   ;;  %v1186_v1 = vld [vmem:[#allocation5 + $0xb0] sm:$0xff]   ;;  %v1190_v3 = vld [vmem:[#allocation5 + $0xa8] sm:$0xff]  }
  0x32   :  { %328 = vmatprep.subr.bf16.mxu0 %v1153_v23  ;;  %371 = vmatprep.subr.bf16.mxu1 %v1156_v24  ;;  %v1193_v4 = vld [vmem:[#allocation5 + $0xe0] sm:$0xff]   ;;  %v1197_v6 = vld [vmem:[#allocation5 + $0xd8] sm:$0xff]   ;;  %v1201_v8 = vld [vmem:[#allocation5 + $0xd0] sm:$0xff]  }
  0x33   :  { %v1194_v5 = vld [vmem:[#allocation5 + $0xa0] sm:$0xff]   ;;  %v1198_v7 = vld [vmem:[#allocation5 + $0x98] sm:$0xff]   ;;  %v1202_v9 = vld [vmem:[#allocation5 + $0x90] sm:$0xff]  }
  0x34   :  { %v1203_v10 = vld [vmem:[#allocation5 + $0x48] sm:$0xff]   ;;  %v1207_v14 = vld [vmem:[#allocation5 + $0x40] sm:$0xff]  }
  0x35   :  { %329 = vmatpush1.bf16.msra.mxu0 %v1155_v25  ;;  %372 = vmatpush1.bf16.msra.mxu1 %v1158_v26  ;;  %v1204_v11 = vld [vmem:[#allocation5 + $0x8] sm:$0xff]   ;;  %v1208_v15 = vld [vmem:[#allocation5] sm:$0xff]  }
  0x36   :  { %330 = vmatprep.subr.bf16.mxu0 %v1159_v27  ;;  %373 = vmatprep.subr.bf16.mxu1 %v1162_v28  ;;  %v1205_v12 = vld [vmem:[#allocation5 + $0xc8] sm:$0xff]   ;;  %v1209_v16 = vld [vmem:[#allocation5 + $0xc0] sm:$0xff]   ;;  %v1211_v28 = vld [vmem:[#allocation5 + $0x138] sm:$0xff]  }
  0x37   :  { %v1206_v13 = vld [vmem:[#allocation5 + $0x88] sm:$0xff]   ;;  %v1210_v17 = vld [vmem:[#allocation5 + $0x80] sm:$0xff]  }
  0x38   :  { %v1217_v37 = vld [vmem:[#allocation5 + $0x108] sm:$0xff]  }
  0x39   :  { %331 = vmatpush1.bf16.msra.mxu0 %v1161_v29  ;;  %374 = vmatpush1.bf16.msra.mxu1 %v1164_v30 }
  0x3a   :  { %332 = vmatprep.subr.bf16.mxu0 %v1165_v31  ;;  %375 = vmatprep.subr.bf16.mxu1 %v1168_v32  ;;  %v1212_v31 = vld [vmem:[#allocation5 + $0x130] sm:$0xff]   ;;  %v1213_v32 = vld [vmem:[#allocation5 + $0x128] sm:$0xff]  }
  0x3d   :  { %333 = vmatpush1.bf16.msra.mxu0 %v1167_v33  ;;  %376 = vmatpush1.bf16.msra.mxu1 %v1170_v34  ;;  %v1214_v33 = vld [vmem:[#allocation5 + $0x120] sm:$0xff]   ;;  %v1215_v34 = vld [vmem:[#allocation5 + $0x118] sm:$0xff]  }
  0x3e   :  { %1069 = vmatprep.subr.bf16.mxu0 %v1292_v35  ;;  %1016 = vmatprep.subr.bf16.mxu1 %v1179_v36  ;;  %v1216_v36 = vld [vmem:[#allocation5 + $0x110] sm:$0xff]  }
  0x9a   :  { %v53_v38 = vpop.permute.xlu0 %52 }
  0x9b   :  { %vm57_vm0 = vcmp.eq.s32.totalorder %v50_v39, %v53_v38 }
  0x9e   :  { %v56_v40 = vpop.permute.xlu0 %55 }
  0x9f   :  { %vm58_vm1 = vcmp.eq.s32.totalorder %v50_v39, %v56_v40  ;;  %v1218_v40 = vld [vmem:[#allocation5 + $0x100] sm:$0xff]  }
  0xa0   :  { %vm1336_vm2 = vmpackc.low %vm58_vm1, %vm57_vm0 }
  0xa1   :  { %961 = vmatmul.mubr.msk.bf16.vlgmr.msra.gmra.mxu0 %vm1336_vm2, %v1293_v45  ;;  %963 = vmatmul.mubr.msk.bf16.vlgmr.msra.gmra.mxu1 %vm1336_vm2, %v1293_v45 }
  0xa2   :  { %1070 = vmatpush3.bf16.msra.mxu0 %v1171_v41  ;;  %1085 = vmatprep.mubr.msk.bf16.mxu0 %vm1294_vm3, %v1292_v35 }
  0xa3   :  { %1071 = vmatprep.subr.bf16.mxu0 %v1292_v35  ;;  %1017 = vmatpush3.bf16.msra.mxu1 %v1180_v42 }
  0xa4   :  { %1018 = vmatprep.subr.bf16.mxu1 %v1183_v44 }
  0xa6   :  { %1072 = vmatpush3.bf16.msra.mxu0 %v1172_v46 }
  0xa7   :  { %1073 = vmatprep.subr.bf16.mxu0 %v1292_v35  ;;  %1019 = vmatpush3.bf16.msra.mxu1 %v1184_v47 }
  0xa8   :  { %1020 = vmatprep.subr.bf16.mxu1 %v1187_v48 }
  0xaa   :  { %1074 = vmatpush3.bf16.msra.mxu0 %v1173_v49 }
  0xab   :  { %1075 = vmatprep.subr.bf16.mxu0 %v1292_v35  ;;  %1021 = vmatpush3.bf16.msra.mxu1 %v1188_v50  ;;  %v966_v50 = vld [vmem:[%s1374_s3] ss:$0 sm:$0xff]  ;;  %s1259_s3 = scalar_lea.vmem %s908_s7, 256 }
  0xac   :  { %1022 = vmatprep.subr.bf16.mxu1 %v1191_v51  ;;  %p1260_p10 = scmp.ne.s32.totalorder %s908_s7, %s1259_s3  ;;  %p1265_p12 = scmp.lt.s32.totalorder %s1259_s3, %s1259_s3 }
  0xae   :  { %1076 = vmatpush3.bf16.msra.mxu0 %v1174_v52  ;;  %p1266_p13 = por %p1265_p12, %p1264_p11 }
  0xaf   :  { %1077 = vmatprep.subr.bf16.mxu0 %v1292_v35  ;;  %1023 = vmatpush3.bf16.msra.mxu1 %v1192_v53 }
  0xb0   :  { %1024 = vmatprep.subr.bf16.mxu1 %v1195_v54  ;;  %p1267_p0 = pnand %p1266_p13, %p1260_p10 }
  0xb2   :  { %1078 = vmatpush3.bf16.msra.mxu0 %v1175_v55 }
  0xb3   :  { %1079 = vmatprep.subr.bf16.mxu0 %v1292_v35  ;;  %1025 = vmatpush3.bf16.msra.mxu1 %v1196_v56 }
  0xb4   :  { %1026 = vmatprep.subr.bf16.mxu1 %v1199_v57 }
  0xb6   :  { %1080 = vmatpush3.bf16.msra.mxu0 %v1176_v58 }
  0xb7   :  { %1081 = vmatprep.subr.bf16.mxu0 %v1292_v35  ;;  %1027 = vmatpush3.bf16.msra.mxu1 %v1200_v59 }
  0xb8   :  { %1028 = vmatprep.subr.bf16.mxu1 %v1203_v10 }
  0xba   :  { %1082 = vmatpush3.bf16.msra.mxu0 %v1177_v60 }
  0xbb   :  { %1083 = vmatprep.subr.bf16.mxu0 %v1292_v35  ;;  %1029 = vmatpush3.bf16.msra.mxu1 %v1204_v11 }
  0xbc   :  { %1030 = vmatprep.subr.bf16.mxu1 %v1207_v14 }
  0xbe   :  { %1084 = vmatpush3.bf16.msra.mxu0 %v1178_v61 }
  0xbf   :  { %1038 = vmatprep.subr.bf16.mxu0 %v1181_v62  ;;  %1031 = vmatpush3.bf16.msra.mxu1 %v1208_v15 }
  0xc0   :  { %1089 = vmatprep.subr.bf16.mxu1 %v1292_v35 }
  0xc1   :  { %1086 = vmatmul.mubr.msk.bf16.vlgmr.msra.gmra.mxu0 %vm1336_vm2, %v1293_v45 }
  0xc2   :  { %1039 = vmatpush3.bf16.msra.mxu0 %v1182_v63 }
  0xc3   :  { %1040 = vmatprep.subr.bf16.mxu0 %v1185_v0 }
  0xc6   :  { %1041 = vmatpush3.bf16.msra.mxu0 %v1186_v1 }
  0xc7   :  { %1042 = vmatprep.subr.bf16.mxu0 %v1189_v2 }
  0xca   :  { %1043 = vmatpush3.bf16.msra.mxu0 %v1190_v3 }
  0xcb   :  { %1044 = vmatprep.subr.bf16.mxu0 %v1193_v4 }
  0xce   :  { %1045 = vmatpush3.bf16.msra.mxu0 %v1194_v5 }
  0xcf   :  { %1046 = vmatprep.subr.bf16.mxu0 %v1197_v6 }
  0xd2   :  { %1047 = vmatpush3.bf16.msra.mxu0 %v1198_v7 }
  0xd3   :  { %1048 = vmatprep.subr.bf16.mxu0 %v1201_v8 }
  0xd6   :  { %1049 = vmatpush3.bf16.msra.mxu0 %v1202_v9 }
  0xd7   :  { %1050 = vmatprep.subr.bf16.mxu0 %v1205_v12 }
  0xda   :  { %1051 = vmatpush3.bf16.msra.mxu0 %v1206_v13 }
  0xdb   :  { %1052 = vmatprep.subr.bf16.mxu0 %v1209_v16 }
  0xde   :  { %1053 = vmatpush3.bf16.msra.mxu0 %v1210_v17 }
 0x161   :  { %v352_v18 = vpop.f32.mrf.mxu0  ;;  %v395_v19 = vpop.f32.mrf.mxu1 }
 0x163   :  { %v354_v20 = vpop.f32.mrf.mxu0  ;;  %v397_v21 = vpop.f32.mrf.mxu1 }
 0x165   :  { %v356_v22 = vpop.f32.mrf.mxu0  ;;  %v399_v23 = vpop.f32.mrf.mxu1 }
 0x166   :  { %v445_v29 = vpack.c.bf16 %v356_v22, %v352_v18  ;;  %v447_v30 = vpack.c.bf16 %v399_v23, %v395_v19 }
 0x167   :  { %v358_v24 = vpop.f32.mrf.mxu0  ;;  %v401_v25 = vpop.f32.mrf.mxu1 }
 0x168   :  { %v446_v26 = vpack.c.bf16 %v358_v24, %v354_v20  ;;  %v448_v27 = vpack.c.bf16 %v401_v25, %v397_v21 }
 0x16a   :  { %809 = vmatprep.mubr.bf16.mxu1 %v446_v26  ;;  %850 = vmatprep.mubr.bf16.mxu0 %v448_v27 }
 0x16b   :  { %810 = vmatmul.mubr.bf16.vlgmr.msra.gmra.mxu1 %v445_v29  ;;  %851 = vmatmul.mubr.bf16.vlgmr.msra.gmra.mxu0 %v447_v30 }
 0x16c   :  { %1090 = vmatpush3.bf16.msra.mxu1 %v1211_v28  ;;  %1105 = vmatprep.mubr.msk.bf16.mxu1 %vm1294_vm3, %v1292_v35 }
 0x16d   :  { %1091 = vmatprep.subr.bf16.mxu1 %v1292_v35 }
 0x170   :  { %1092 = vmatpush3.bf16.msra.mxu1 %v1212_v31 }
 0x171   :  { %1093 = vmatprep.subr.bf16.mxu1 %v1292_v35 }
 0x174   :  { %1094 = vmatpush3.bf16.msra.mxu1 %v1213_v32 }
 0x175   :  { %1095 = vmatprep.subr.bf16.mxu1 %v1292_v35 }
 0x178   :  { %1096 = vmatpush3.bf16.msra.mxu1 %v1214_v33 }
 0x179   :  { %1097 = vmatprep.subr.bf16.mxu1 %v1292_v35 }
 0x17c   :  { %1098 = vmatpush3.bf16.msra.mxu1 %v1215_v34 }
 0x17d   :  { %1099 = vmatprep.subr.bf16.mxu1 %v1292_v35 }
 0x180   :  { %1100 = vmatpush3.bf16.msra.mxu1 %v1216_v36 }
 0x181   :  { %v438_v38 = vpop.f32.mrf.mxu0  ;;  %1101 = vmatprep.subr.bf16.mxu1 %v1292_v35 }
 0x183   :  { %v1087_v39 = vpop.f32.mrf.mxu0 }
 0x184   :  { %1102 = vmatpush3.bf16.msra.mxu1 %v1217_v37 }
 0x185   :  { %v441_v41 = vpop.f32.mrf.mxu0  ;;  %1103 = vmatprep.subr.bf16.mxu1 %v1292_v35 }
 0x186   :  { %v449_v43 = vpack.c.bf16 %v441_v41, %v438_v38 }
 0x187   :  { %v1088_v42 = vpop.f32.mrf.mxu0 }
 0x188   :  { %1104 = vmatpush3.bf16.msra.mxu1 %v1218_v40 }
 0x18b   :  { %1106 = vmatmul.mubr.bf16.vlgmr.msra.gmra.mxu1 %v449_v43 }
 0x22b   :  { %v1032_v44 = vpop.f32.mrf.mxu1  ;;  %v1054_v46 = vpop.f32.mrf.mxu0 }
 0x22d   :  { %v1033_v45 = vpop.f32.mrf.mxu1  ;;  %v1055_v48 = vpop.f32.mrf.mxu0 }
 0x22e   :  { %v1034_v49 = vadd.f32 %v1033_v45, %v1032_v44  ;;  %v1056_v55 = vadd.f32 %v1055_v48, %v1054_v46 }
 0x22f   :  { %v1035_v47 = vpop.f32.mrf.mxu1  ;;  %v1057_v52 = vpop.f32.mrf.mxu0 }
 0x230   :  { %v812_v53 = vadd.f32 %v1034_v49, %v966_v50 }
 0x231   :  { %v1036_v51 = vpop.f32.mrf.mxu1  ;;  %v1058_v35 = vpop.f32.mrf.mxu0 }
 0x232   :  { %v1037_v54 = vadd.f32 %v1036_v51, %v1035_v47  ;;  %v853_v57 = vadd.f32 %v1056_v55, %v812_v53  ;;  %v1059_v59 = vadd.f32 %v1058_v35, %v1057_v52 }
 0x234   :  { %v815_v56 = vadd.f32 %v1037_v54, %v966_v50 }
 0x236   :  { %v856_v62 = vadd.f32 %v1059_v59, %v815_v56 }
 0x24b   :  { %v893_v58 = vpop.f32.mrf.mxu1 }
 0x24c   :  { %v894_v60 = vadd.f32 %v893_v58, %v853_v57 }
 0x24d   :  { %v1107_v61 = vpop.f32.mrf.mxu1 }
 0x24e   :  { %900 = vst [vmem:[#allocation7] sm:$0xff] %v894_v60 }
 0x24f   :  { %v896_v63 = vpop.f32.mrf.mxu1 }
 0x250   :  { %v897_v0 = vadd.f32 %v896_v63, %v856_v62 }
 0x251   :  { %v1108_v1 = vpop.f32.mrf.mxu1 }
 0x252   :  { %901 = vst [vmem:[#allocation7 + $0x8] sm:$0xff] %v897_v0 }
 0x253   :  { %1270 = shalt.err (!%p1267_p0)
}
 0x254   :  { %s1296_s8 = smov 128   ;;  %s1297_s9 = smov 8  }
 0x255   :  { %913 = dma.vmem_to_hbm [thread:$0]  %s908_s7, 256, %s1375_s4, [#allocation4], %s1296_s8, %s1296_s8, %s1297_s9  }
 0x256   :  { %1283 = dma.done.wait [#allocation4], 256  }
 0x257   :  { %1284 = vsyncadd [#allocation4], 4294967040 }
 0x258   :  { %917 = vsyncpa [#allocation3], 1 }
 0x259   :  { %918 = vsyncpa [#allocation6], 1 }
 0x25a   :  { %919 = vsyncpa [#allocation4], 1 }

</bundles_post_ra>
